<compile_context>
chip_gen: v6e
topology: v6e:2x2x1
jax: 0.10.0
libtpu: 0.0.40
codegen_flags: <defaults>
</compile_context>

<pallas_src>
import math

import jax
import jax.numpy as jnp
from jax.experimental import pallas as pl
from jax.experimental.pallas import tpu as pltpu


def _posenc_kernel(x_ref, pe_ref, o_ref):
    # x_ref / o_ref: (bb, ts, d_model) tiles of the input / output.
    # pe_ref       : (ts, d_model) matching positional-table tile (same dtype as x).
    # dropout == identity in eval mode; add in the native dtype (no f32 round-trip).
    o_ref[...] = x_ref[...] + pe_ref[...][None, :, :]


def make_positional_encoding(d_model, seq_len, dtype=jnp.float32):
    """Build the (seq_len, d_model) sin/cos table exactly like the module init."""
    position = jnp.arange(seq_len, dtype=jnp.float32)[:, None]             # (S, 1)
    div_term = jnp.exp(jnp.arange(0, d_model, 2, dtype=jnp.float32)
                       * (-math.log(1000.0) / d_model))                    # (ceil(D/2),)
    angles = position * div_term                                           # (S, ceil(D/2))
    pe = jnp.zeros((seq_len, d_model), jnp.float32)
    # Slice angles so odd d_model also works (cos gets floor(D/2) columns).
    pe = pe.at[:, 0::2].set(jnp.sin(angles[:, : (d_model + 1) // 2]))
    pe = pe.at[:, 1::2].set(jnp.cos(angles[:, : d_model // 2]))
    return pe.astype(dtype)


def _pick_tiles(batch, seq, d_model, itemsize, target_block_bytes=4 << 20):
    """Choose (bb, ts): seq tile (mult. of 8 or full extent) and batch block so that
    one x/out block is as close to ~target_block_bytes as possible."""
    row_bytes = max(d_model * itemsize, 1)
    seq_cands = sorted({d for d in range(8, seq + 1, 8) if seq % d == 0} | {seq},
                       reverse=True)
    ts = next((c for c in seq_cands if c * row_bytes <= target_block_bytes),
              seq_cands[-1])
    bb = 1
    for c in sorted({d for d in range(1, batch + 1) if batch % d == 0}, reverse=True):
        if c * ts * row_bytes <= target_block_bytes:
            bb = c
            break
    return bb, ts


def positional_encoding(x, pe):
    """x: (batch, seq, d_model); pe: (>=seq, d_model) -> (batch, seq, d_model)."""
    batch, seq, d_model = x.shape
    assert pe.shape[0] >= seq and pe.shape[1] == d_model

    # forward slices pe[:, :x.shape[1], :]; cast once so we never stream f32
    # against a lower-precision activation.
    pe = pe[:seq].astype(x.dtype)

    itemsize = jnp.dtype(x.dtype).itemsize
    bb, ts = _pick_tiles(batch, seq, d_model, itemsize)
    grid = (seq // ts, batch // bb)  # batch innermost -> pe tile reused across it

    # VMEM budget: double-buffered x and out blocks + double-buffered pe tile
    # + headroom; capped at 48 MiB to stay inside v7x's 64 MiB/TC VMEM.
    blk_bytes = bb * ts * d_model * itemsize
    pe_blk_bytes = ts * d_model * itemsize
    vmem_limit = int(min(max(4 * blk_bytes + 2 * pe_blk_bytes + (4 << 20), 16 << 20),
                         48 << 20))

    return pl.pallas_call(
        _posenc_kernel,
        out_shape=jax.ShapeDtypeStruct((batch, seq, d_model), x.dtype),
        grid_spec=pltpu.PrefetchScalarGridSpec(
            num_scalar_prefetch=0,
            grid=grid,
            in_specs=[
                # x tile: (bb, ts, d_model)
                pl.BlockSpec((bb, ts, d_model), lambda s, b: (b, s, 0)),
                # pe tile: depends only on the seq axis -> the redundant DMA
                # across consecutive (inner) batch steps is skipped by Pallas.
                pl.BlockSpec((ts, d_model), lambda s, b: (s, 0)),
            ],
            out_specs=pl.BlockSpec((bb, ts, d_model), lambda s, b: (b, s, 0)),
        ),
        compiler_params=pltpu.CompilerParams(
            dimension_semantics=("parallel", "arbitrary"),
            vmem_limit_bytes=vmem_limit,
        ),
    )(x, pe)


if __name__ == "__main__":
    key = jax.random.PRNGKey(0)

    # Small, lane-dense demo shapes (d_model multiple of 128, seq multiple of 8).
    batch, seq_len, d_model = 4, 64, 128
    dropout_p = 0.1  # identity in eval mode

    x = jax.random.normal(key, (batch, seq_len, d_model), jnp.float32)
    pe = make_positional_encoding(d_model, seq_len)

    out = positional_encoding(x, pe)
    out = jax.block_until_ready(out)

    # Reference check in plain JAX (eval-mode dropout == identity).
    ref = x + pe[None, :seq_len, :].astype(x.dtype)
    assert out.shape == (batch, seq_len, d_model)
    assert jnp.allclose(out, ref, atol=1e-6, rtol=1e-6)

    print("KERNEL_OK")
</pallas_src>

<mosaic_0001>
module attributes {stable_mosaic.version = 11 : i64} {
  func.func @_posenc_kernel(%arg0: i32, %arg1: i32, %arg2: memref<4x64x128xf32, #tpu.memory_space<vmem>>, %arg3: memref<64x128xf32, #tpu.memory_space<vmem>>, %arg4: memref<4x64x128xf32, #tpu.memory_space<vmem>>) attributes {dimension_semantics = [#tpu.dimension_semantics<parallel>, #tpu.dimension_semantics<arbitrary>], iteration_bounds = array<i64: 1, 1>, scalar_prefetch = 0 : i64, scratch_operands = 0 : i64, tpu.core_type = #tpu.core_type<tc>, window_params = [{transform_indices = @transform_0, window_bounds = array<i64: 4, 64, 128>}, {transform_indices = @transform_1, window_bounds = array<i64: 64, 128>}, {transform_indices = @transform_2, window_bounds = array<i64: 4, 64, 128>}]} {
    %c0 = arith.constant 0 : index
    %c0_0 = arith.constant 0 : index
    %c0_1 = arith.constant 0 : index
    %0 = vector.load %arg2[%c0, %c0_0, %c0_1] : memref<4x64x128xf32, #tpu.memory_space<vmem>>, vector<4x64x128xf32>
    %c0_2 = arith.constant 0 : index
    %c0_3 = arith.constant 0 : index
    %1 = vector.load %arg3[%c0_2, %c0_3] : memref<64x128xf32, #tpu.memory_space<vmem>>, vector<64x128xf32>
    %2 = vector.shape_cast %1 : vector<64x128xf32> to vector<1x64x128xf32>
    %3 = vector.broadcast %2 : vector<1x64x128xf32> to vector<4x64x128xf32>
    %4 = arith.addf %0, %3 : vector<4x64x128xf32>
    %c0_4 = arith.constant 0 : index
    %c0_5 = arith.constant 0 : index
    %c0_6 = arith.constant 0 : index
    %5 = vector.load %arg4[%c0_4, %c0_5, %c0_6] : memref<4x64x128xf32, #tpu.memory_space<vmem>>, vector<4x64x128xf32>
    tpu.vector_store %arg4[%c0_4, %c0_5, %c0_6], %4 {strides = array<i32>} : memref<4x64x128xf32, #tpu.memory_space<vmem>>, vector<4x64x128xf32>,
    return
  }
  func.func @transform_0(%arg0: i32, %arg1: i32) -> (i32, i32, i32) {
    %c0_i32 = arith.constant 0 : i32
    %c0_i32_0 = arith.constant 0 : i32
    return %arg1, %arg0, %c0_i32 : i32, i32, i32
  }
  func.func @transform_1(%arg0: i32, %arg1: i32) -> (i32, i32) {
    %c0_i32 = arith.constant 0 : i32
    %c0_i32_0 = arith.constant 0 : i32
    return %arg0, %c0_i32 : i32, i32
  }
  func.func @transform_2(%arg0: i32, %arg1: i32) -> (i32, i32, i32) {
    %c0_i32 = arith.constant 0 : i32
    %c0_i32_0 = arith.constant 0 : i32
    return %arg1, %arg0, %c0_i32 : i32, i32, i32
  }
}

</mosaic_0001>

<bundles_post_ra>
// kernel: tpu_custom_call.1
= control target key start
LH: loop header
LB: loop body
LE: loop exit
PB: predicated region body
PF: predicated region fallthrough
CT: control target
= control target key end

     0   :  { %7 = vsyncpa [#allocation3], 0  ;;  %s319_s0 = inlined_call_operand.hbm [shape: f32[4,64,128], index: 0, kind: input, shape index: {}]   ;;  %s320_s1 = inlined_call_operand.hbm [shape: f32[64,128], index: 1, kind: input, shape index: {}]   ;;  %s321_s2 = inlined_call_operand.hbm [shape: f32[4,64,128], index: 2, kind: output, shape index: {}]  }
   0x1   :  { %8 = vsyncpa [#allocation6], 0 }
   0x2   :  { %9 = vsyncpa [#allocation4], 0  ;;  %s233_s9 = smov [#allocation2]  }
   0x3   :  { %s15_s10 = sshll.u32 %s233_s9, 4  ;;  %s16_s10 = int_to_ptr.vmem [resolvable:$true] %s15_s10 }
   0x4   :  { %s175_s11 = scalar_lea.vmem %s16_s10, 4096  ;;  %p180_p1 = scmp.lt.s32.totalorder %s16_s10, %s16_s10 }
   0x5   :  { %p176_p0 = scmp.ne.s32.totalorder %s16_s10, %s175_s11  ;;  %p181_p2 = scmp.lt.s32.totalorder %s175_s11, %s175_s11 }
   0x7   :  { %p182_p3 = por %p181_p2, %p180_p1 }
   0x9   :  { %p183_p4 = pnand %p182_p3, %p176_p0 }
   0xb   :  { %186 = shalt.err (!%p183_p4)
}
   0xc   :  { %s234_s12 = smov 128   ;;  %s235_s13 = smov 8  }
   0xd   :  { %21 = dma.hbm_to_vmem [thread:$0]  %s319_s0, 4096, %s16_s10, [#allocation3], %s234_s12, %s234_s12, %s235_s13  }
   0xe   :  { %s236_s16 = smov [#allocation5]  }
   0xf   :  { %s27_s17 = sshll.u32 %s236_s16, 4  ;;  %s28_s17 = int_to_ptr.vmem [resolvable:$true] %s27_s17 }
  0x10   :  { %s195_s18 = scalar_lea.vmem %s28_s17, 1024  ;;  %p200_p6 = scmp.lt.s32.totalorder %s28_s17, %s28_s17 }
  0x11   :  { %p196_p5 = scmp.ne.s32.totalorder %s28_s17, %s195_s18  ;;  %p201_p7 = scmp.lt.s32.totalorder %s195_s18, %s195_s18 }
  0x13   :  { %p202_p8 = por %p201_p7, %p200_p6 }
  0x15   :  { %p203_p9 = pnand %p202_p8, %p196_p5 }
  0x17   :  { %206 = shalt.err (!%p203_p9)
}
  0x18   :  { %33 = dma.hbm_to_vmem [thread:$0]  %s320_s1, 1024, %s28_s17, [#allocation6], %s234_s12, %s234_s12, %s235_s13  }
  0x19   :  { %227 = dma.done.wait [#allocation3], 4096  }
  0x1a   :  { %228 = vsyncadd [#allocation3], 4294963200 }
  0x1b   :  { %229 = dma.done.wait [#allocation6], 1024  }
  0x1c   :  { %230 = vsyncadd [#allocation6], 4294966272  ;;  %v40_v0 = vld [vmem:[#allocation2] sm:$0xff]  ;;  %v41_v2 = vld [vmem:[#allocation2 + $0x8] sm:$0xff]  ;;  %s237_s0 = smov [#allocation7]  }
  0x1d   :  { %v265_v1 = vld [vmem:[#allocation5] sm:$0xff]  ;;  %v268_v4 = vld [vmem:[#allocation5 + $0x8] sm:$0xff]  ;;  %v42_v5 = vld [vmem:[#allocation2 + $0x10] sm:$0xff]  ;;  %s149_s1 = sshll.u32 %s237_s0, 4  ;;  %s150_s1 = int_to_ptr.vmem [resolvable:$true] %s149_s1 }
  0x1e   :  { %v80_v3 = vadd.f32 %v265_v1, %v40_v0  ;;  %v270_v6 = vld [vmem:[#allocation5 + $0x10] sm:$0xff]  ;;  %v81_v7 = vadd.f32 %v268_v4, %v41_v2  ;;  %v43_v9 = vld [vmem:[#allocation2 + $0x18] sm:$0xff]  ;;  %v44_v11 = vld [vmem:[#allocation2 + $0x20] sm:$0xff]  ;;  %s207_s21 = scalar_lea.vmem %s150_s1, 4096  ;;  %p212_p11 = scmp.lt.s32.totalorder %s150_s1, %s150_s1 }
  0x1f   :  { %v82_v8 = vadd.f32 %v270_v6, %v42_v5  ;;  %v274_v10 = vld [vmem:[#allocation5 + $0x18] sm:$0xff]  ;;  %v277_v13 = vld [vmem:[#allocation5 + $0x20] sm:$0xff]  ;;  %v45_v14 = vld [vmem:[#allocation2 + $0x28] sm:$0xff]  ;;  %p208_p10 = scmp.ne.s32.totalorder %s150_s1, %s207_s21  ;;  %p213_p12 = scmp.lt.s32.totalorder %s207_s21, %s207_s21 }
  0x20   :  { %112 = vst [vmem:[#allocation7] sm:$0xff] %v80_v3  ;;  %v83_v12 = vadd.f32 %v274_v10, %v43_v9  ;;  %v279_v15 = vld [vmem:[#allocation5 + $0x28] sm:$0xff]  ;;  %113 = vst [vmem:[#allocation7 + $0x8] sm:$0xff] %v81_v7  ;;  %v84_v16 = vadd.f32 %v277_v13, %v44_v11  ;;  %v46_v18 = vld [vmem:[#allocation2 + $0x30] sm:$0xff] }
  0x21   :  { %114 = vst [vmem:[#allocation7 + $0x10] sm:$0xff] %v82_v8  ;;  %v85_v17 = vadd.f32 %v279_v15, %v45_v14  ;;  %v283_v19 = vld [vmem:[#allocation5 + $0x30] sm:$0xff]  ;;  %v47_v20 = vld [vmem:[#allocation2 + $0x38] sm:$0xff]  ;;  %v48_v23 = vld [vmem:[#allocation2 + $0x40] sm:$0xff]  ;;  %p214_p13 = por %p213_p12, %p212_p11 }
  0x22   :  { %115 = vst [vmem:[#allocation7 + $0x18] sm:$0xff] %v83_v12  ;;  %v86_v21 = vadd.f32 %v283_v19, %v46_v18  ;;  %v286_v22 = vld [vmem:[#allocation5 + $0x38] sm:$0xff]  ;;  %v49_v24 = vld [vmem:[#allocation2 + $0x48] sm:$0xff]  ;;  %116 = vst [vmem:[#allocation7 + $0x20] sm:$0xff] %v84_v16  ;;  %v88_v26 = vadd.f32 %v265_v1, %v48_v23 }
  0x23   :  { %117 = vst [vmem:[#allocation7 + $0x28] sm:$0xff] %v85_v17  ;;  %v87_v25 = vadd.f32 %v286_v22, %v47_v20  ;;  %v89_v27 = vadd.f32 %v268_v4, %v49_v24  ;;  %v50_v28 = vld [vmem:[#allocation2 + $0x50] sm:$0xff]  ;;  %v51_v29 = vld [vmem:[#allocation2 + $0x58] sm:$0xff]  ;;  %v52_v30 = vld [vmem:[#allocation2 + $0x60] sm:$0xff]  ;;  %p215_p0 = pnand %p214_p13, %p208_p10 }
  0x24   :  { %118 = vst [vmem:[#allocation7 + $0x30] sm:$0xff] %v86_v21  ;;  %v90_v31 = vadd.f32 %v270_v6, %v50_v28  ;;  %v91_v32 = vadd.f32 %v274_v10, %v51_v29  ;;  %v92_v33 = vadd.f32 %v277_v13, %v52_v30  ;;  %v53_v34 = vld [vmem:[#allocation2 + $0x68] sm:$0xff]  ;;  %v54_v35 = vld [vmem:[#allocation2 + $0x70] sm:$0xff]  ;;  %v55_v36 = vld [vmem:[#allocation2 + $0x78] sm:$0xff] }
  0x25   :  { %119 = vst [vmem:[#allocation7 + $0x38] sm:$0xff] %v87_v25  ;;  %120 = vst [vmem:[#allocation7 + $0x40] sm:$0xff] %v88_v26  ;;  %v93_v37 = vadd.f32 %v279_v15, %v53_v34  ;;  %v94_v38 = vadd.f32 %v283_v19, %v54_v35  ;;  %v95_v39 = vadd.f32 %v286_v22, %v55_v36  ;;  %v56_v40 = vld [vmem:[#allocation2 + $0x80] sm:$0xff]  ;;  %v57_v41 = vld [vmem:[#allocation2 + $0x88] sm:$0xff] }
  0x26   :  { %121 = vst [vmem:[#allocation7 + $0x48] sm:$0xff] %v89_v27  ;;  %v58_v42 = vld [vmem:[#allocation2 + $0x90] sm:$0xff]  ;;  %122 = vst [vmem:[#allocation7 + $0x50] sm:$0xff] %v90_v31  ;;  %v96_v43 = vadd.f32 %v265_v1, %v56_v40  ;;  %v97_v44 = vadd.f32 %v268_v4, %v57_v41  ;;  %v59_v46 = vld [vmem:[#allocation2 + $0x98] sm:$0xff] }
  0x27   :  { %123 = vst [vmem:[#allocation7 + $0x58] sm:$0xff] %v91_v32  ;;  %124 = vst [vmem:[#allocation7 + $0x60] sm:$0xff] %v92_v33  ;;  %v98_v45 = vadd.f32 %v270_v6, %v58_v42  ;;  %v60_v47 = vld [vmem:[#allocation2 + $0xa0] sm:$0xff]  ;;  %v61_v48 = vld [vmem:[#allocation2 + $0xa8] sm:$0xff]  ;;  %v99_v49 = vadd.f32 %v274_v10, %v59_v46 }
  0x28   :  { %125 = vst [vmem:[#allocation7 + $0x68] sm:$0xff] %v93_v37  ;;  %126 = vst [vmem:[#allocation7 + $0x70] sm:$0xff] %v94_v38  ;;  %v100_v50 = vadd.f32 %v277_v13, %v60_v47  ;;  %v101_v51 = vadd.f32 %v279_v15, %v61_v48  ;;  %v62_v52 = vld [vmem:[#allocation2 + $0xb0] sm:$0xff]  ;;  %v63_v53 = vld [vmem:[#allocation2 + $0xb8] sm:$0xff] }
  0x29   :  { %127 = vst [vmem:[#allocation7 + $0x78] sm:$0xff] %v95_v39  ;;  %v64_v54 = vld [vmem:[#allocation2 + $0xc0] sm:$0xff]  ;;  %128 = vst [vmem:[#allocation7 + $0x80] sm:$0xff] %v96_v43  ;;  %v102_v55 = vadd.f32 %v283_v19, %v62_v52  ;;  %v103_v56 = vadd.f32 %v286_v22, %v63_v53  ;;  %v65_v58 = vld [vmem:[#allocation2 + $0xc8] sm:$0xff] }
  0x2a   :  { %129 = vst [vmem:[#allocation7 + $0x88] sm:$0xff] %v97_v44  ;;  %130 = vst [vmem:[#allocation7 + $0x90] sm:$0xff] %v98_v45  ;;  %v104_v57 = vadd.f32 %v265_v1, %v64_v54  ;;  %v66_v59 = vld [vmem:[#allocation2 + $0xd0] sm:$0xff]  ;;  %v67_v60 = vld [vmem:[#allocation2 + $0xd8] sm:$0xff]  ;;  %v105_v61 = vadd.f32 %v268_v4, %v65_v58 }
  0x2b   :  { %131 = vst [vmem:[#allocation7 + $0x98] sm:$0xff] %v99_v49  ;;  %132 = vst [vmem:[#allocation7 + $0xa0] sm:$0xff] %v100_v50  ;;  %v106_v62 = vadd.f32 %v270_v6, %v66_v59  ;;  %v107_v63 = vadd.f32 %v274_v10, %v67_v60  ;;  %v68_v0 = vld [vmem:[#allocation2 + $0xe0] sm:$0xff]  ;;  %v69_v2 = vld [vmem:[#allocation2 + $0xe8] sm:$0xff] }
  0x2c   :  { %133 = vst [vmem:[#allocation7 + $0xa8] sm:$0xff] %v101_v51  ;;  %v70_v3 = vld [vmem:[#allocation2 + $0xf0] sm:$0xff]  ;;  %134 = vst [vmem:[#allocation7 + $0xb0] sm:$0xff] %v102_v55  ;;  %v108_v1 = vadd.f32 %v277_v13, %v68_v0  ;;  %v109_v5 = vadd.f32 %v279_v15, %v69_v2  ;;  %v71_v8 = vld [vmem:[#allocation2 + $0xf8] sm:$0xff] }
  0x2d   :  { %135 = vst [vmem:[#allocation7 + $0xb8] sm:$0xff] %v103_v56  ;;  %136 = vst [vmem:[#allocation7 + $0xc0] sm:$0xff] %v104_v57  ;;  %v110_v7 = vadd.f32 %v283_v19, %v70_v3  ;;  %v111_v4 = vadd.f32 %v286_v22, %v71_v8 }
  0x2e   :  { %137 = vst [vmem:[#allocation7 + $0xc8] sm:$0xff] %v105_v61  ;;  %138 = vst [vmem:[#allocation7 + $0xd0] sm:$0xff] %v106_v62 }
  0x2f   :  { %139 = vst [vmem:[#allocation7 + $0xd8] sm:$0xff] %v107_v63  ;;  %140 = vst [vmem:[#allocation7 + $0xe0] sm:$0xff] %v108_v1 }
  0x30   :  { %141 = vst [vmem:[#allocation7 + $0xe8] sm:$0xff] %v109_v5  ;;  %142 = vst [vmem:[#allocation7 + $0xf0] sm:$0xff] %v110_v7 }
  0x31   :  { %143 = vst [vmem:[#allocation7 + $0xf8] sm:$0xff] %v111_v4 }
  0x32   :  { %218 = shalt.err (!%p215_p0)
}
  0x33   :  { %155 = dma.vmem_to_hbm [thread:$0]  %s150_s1, 4096, %s321_s2, [#allocation4], %s234_s12, %s234_s12, %s235_s13  }
  0x34   :  { %231 = dma.done.wait [#allocation4], 4096  }
  0x35   :  { %232 = vsyncadd [#allocation4], 4294963200 }
  0x36   :  { %159 = vsyncpa [#allocation3], 1 }
  0x37   :  { %160 = vsyncpa [#allocation6], 1 }
  0x38   :  { %161 = vsyncpa [#allocation4], 1 }

</bundles_post_ra>
